<compile_context>
chip_gen: v5e
topology: v5e:2x2
jax: 0.10.0
libtpu: 0.0.40
codegen_flags: <defaults>
</compile_context>

<pallas_src>
import functools

import jax
import jax.numpy as jnp
from jax.experimental import pallas as pl
from jax.experimental.pallas import tpu as pltpu


def _pick_vmem_limit():
    """Per-generation VMEM request: leave headroom on 64-MiB v7x."""
    try:
        cap = int(getattr(pltpu.get_tpu_info(), "vmem_capacity_bytes", 0))
    except Exception:
        cap = 0
    if cap <= 0:
        return 64 << 20
    return int(max(32 << 20, min(96 << 20, cap - (16 << 20))))


def _ul_block_kernel(logits_ref, target_ref, out_ref, counts_ref, tril_ref, *,
                     ignore_index, num_rows):
    i = pl.program_id(0)
    tm, v = logits_ref.shape

    # First row block: zero carried state and build the tril constant once.
    @pl.when(i == 0)
    def _():
        counts_ref[...] = jnp.zeros_like(counts_ref)
        out_ref[...] = jnp.zeros_like(out_ref)
        row_i = jax.lax.broadcasted_iota(jnp.int32, (tm, tm), 0)
        col_j = jax.lax.broadcasted_iota(jnp.int32, (tm, tm), 1)
        tril_ref[...] = (col_j < row_i).astype(jnp.bfloat16)

    x = logits_ref[...].astype(jnp.float32)          # (tm, V)
    t = target_ref[...]                              # (tm, 1) int32

    # Row validity: real row (not the ragged OOB tail) AND not ignore_index.
    rows = i * tm + jax.lax.broadcasted_iota(jnp.int32, (tm, 1), 0)
    valid = (t != ignore_index) & (rows < num_rows)  # (tm, 1) bool

    vocab_ids = jax.lax.broadcasted_iota(jnp.int32, (tm, v), 1)
    onehot = (vocab_ids == t)                        # (tm, V) bool
    onehot_v = onehot & valid                        # drops ignored + OOB rows
    ohb = onehot_v.astype(jnp.bfloat16)              # exact 0/1

    # ---- prefix-occurrence counts -------------------------------------------
    # in-block strict-lower-triangular prefix via a small bf16 MXU matmul
    # (0/1 operands, f32 accumulation => exact).
    in_block = jnp.dot(tril_ref[...], ohb,
                       preferred_element_type=jnp.float32)      # (tm, V)
    total_counts = counts_ref[...] + in_block                   # (1,V)+(tm,V)

    # neg[r, v] = (#prev occurrences of v > 0) and v != t[r] and row r valid.
    # (ignore_index column is automatically 0 because counts use onehot_v.)
    neg = (total_counts > 0.0) & valid & jnp.logical_not(onehot_v)

    # ---- softmax pieces (single exp pass) -----------------------------------
    m = jnp.max(x, axis=-1, keepdims=True)                      # (tm, 1)
    ex = jnp.exp(x - m)                                         # (tm, V)
    sum_ex = jnp.sum(ex, axis=-1, keepdims=True)                # (tm, 1)
    lse = jnp.log(sum_ex)                                       # (tm, 1)

    # ---- unlikelihood term: -log(clamp(1-p, 1e-5)) exactly, no division -----
    log_inv = lse - jnp.log(jnp.maximum(sum_ex - ex, 1e-5 * sum_ex))
    ul_sum = jnp.sum(jnp.where(neg, log_inv, 0.0))

    # ---- likelihood (cross-entropy, ignore_index), target column only -------
    x_t = jnp.sum(jnp.where(onehot_v, x, 0.0), axis=-1, keepdims=True)
    nll_rows = (m + lse) - x_t                                  # (tm, 1)
    nll_sum = jnp.sum(jnp.where(valid, nll_rows, 0.0))
    n_valid = jnp.sum(valid.astype(jnp.float32))

    # Carry per-vocab counts forward: counts_after = counts_before + colsum.
    # Reuse the last row of the strict-prefix matmul (exact f32 integers).
    counts_ref[...] = (total_counts[tm - 1:tm, :]
                       + ohb[tm - 1:tm, :].astype(jnp.float32))

    # Accumulate partials into the resident (1, 128) output block:
    # lane 0 = ul_sum, lane 1 = nll_sum, lane 2 = n_valid.
    lane = jax.lax.broadcasted_iota(jnp.int32, (1, 128), 1)
    contrib = jnp.where(lane == 0, ul_sum,
              jnp.where(lane == 1, nll_sum,
              jnp.where(lane == 2, n_valid, 0.0)))
    out_ref[...] += contrib


def unlikelihood_loss(logits, target, *, alpha, ignore_index=0, block_rows=128):
    """logits: (..., V) float32/bfloat16, target: (...,) int. Returns scalar."""
    vocab = logits.shape[-1]
    x = logits.reshape(-1, vocab)
    t = target.reshape(-1, 1).astype(jnp.int32)
    n = x.shape[0]

    # Row-tile size: multiple of the dtype's sublane packing, capped by
    # block_rows and by the (rounded-up) row count.
    sub = {4: 8, 2: 16, 1: 32}.get(jnp.dtype(x.dtype).itemsize, 8)
    tm = min(max(block_rows, sub), ((n + sub - 1) // sub) * sub)
    tm = ((tm + sub - 1) // sub) * sub

    if tm > n:
        # Degenerate tiny-N case only (n smaller than one sublane-aligned
        # tile): pad a handful of rows so block_shape <= array_shape.  This is
        # never a full copy of a large logits matrix.
        x = jnp.pad(x, ((0, tm - n), (0, 0)))
        t = jnp.pad(t, ((0, tm - n), (0, 0)), constant_values=ignore_index)

    num_blocks = pl.cdiv(x.shape[0], tm)

    partials = pl.pallas_call(
        functools.partial(_ul_block_kernel, ignore_index=ignore_index,
                          num_rows=n),
        out_shape=jax.ShapeDtypeStruct((1, 128), jnp.float32),
        grid_spec=pltpu.PrefetchScalarGridSpec(
            num_scalar_prefetch=0,
            grid=(num_blocks,),
            in_specs=[pl.BlockSpec((tm, vocab), lambda i: (i, 0)),
                      pl.BlockSpec((tm, 1), lambda i: (i, 0))],
            out_specs=pl.BlockSpec((1, 128), lambda i: (0, 0)),
            scratch_shapes=[pltpu.VMEM((1, vocab), jnp.float32),
                            pltpu.VMEM((tm, tm), jnp.bfloat16)]),
        compiler_params=pltpu.CompilerParams(
            # Row-block axis is sequential (carried prefix counts + resident
            # output accumulator).
            dimension_semantics=("arbitrary",),
            vmem_limit_bytes=_pick_vmem_limit()),
    )(x, t)

    ul_sum = partials[0, 0]
    nll_sum = partials[0, 1]
    n_valid = partials[0, 2]
    denom = jnp.maximum(n_valid, 1.0)          # guard against all-ignored
    return alpha * (ul_sum / denom) + (nll_sum / denom)


# ---------------------------------------------------------------------------
# Pure-JAX reference (mirrors the PyTorch forward exactly), used for checking.
# ---------------------------------------------------------------------------
def unlikelihood_loss_ref(logits, target, *, alpha, ignore_index=0):
    vocab = logits.shape[-1]
    x = logits.reshape(-1, vocab).astype(jnp.float32)
    t = target.reshape(-1).astype(jnp.int32)
    n = t.shape[0]

    logp = jax.nn.log_softmax(x, axis=-1)

    cand = jnp.where(jnp.arange(n)[None, :] < jnp.arange(n)[:, None],
                     t[None, :], ignore_index)
    cand = jnp.where(cand == t[:, None], ignore_index, cand)
    neg = jnp.zeros((n, vocab), jnp.float32)
    neg = neg.at[jnp.arange(n)[:, None], cand].set(1.0)
    neg = jnp.where(t[:, None] == ignore_index, 0.0, neg)
    neg = neg.at[:, ignore_index].set(0.0)

    inv = jnp.maximum(1.0 - jnp.exp(logp), 1e-5)
    ul = jnp.sum(-jnp.log(inv) * neg, axis=-1)
    n_valid = jnp.sum(t != ignore_index)
    ul = jnp.sum(ul) / n_valid

    nll = -jnp.take_along_axis(logp, t[:, None], axis=-1)[:, 0]
    mle = jnp.sum(jnp.where(t != ignore_index, nll, 0.0)) / n_valid
    return alpha * ul + mle


if __name__ == "__main__":
    # Small shapes consistent with the module: batch=2, seq=8, vocab=128.
    B, T, V = 2, 8, 128
    alpha = 0.5
    ignore_index = 0

    key = jax.random.PRNGKey(0)
    k_logits, k_tgt, k_logits2, k_tgt2 = jax.random.split(key, 4)
    logits = jax.random.normal(k_logits, (B, T, V), dtype=jnp.float32)
    target = jax.random.randint(k_tgt, (B, T), 0, V, dtype=jnp.int32)
    # Sprinkle a few ignore_index (=0) tokens (padding-like).
    target = target.at[0, -1].set(ignore_index)
    target = target.at[1, 0].set(ignore_index)

    ref = unlikelihood_loss_ref(logits, target, alpha=alpha,
                                ignore_index=ignore_index)

    # Default (single-block) config.
    out = jax.block_until_ready(
        unlikelihood_loss(logits, target, alpha=alpha,
                          ignore_index=ignore_index))
    assert jnp.allclose(out, ref, rtol=1e-4, atol=1e-4), (out, ref)

    # Multi-block config (block_rows=8 -> 2 row blocks): exercises the carried
    # cross-block prefix-count path.
    out_mb = jax.block_until_ready(
        unlikelihood_loss(logits, target, alpha=alpha,
                          ignore_index=ignore_index, block_rows=8))
    assert jnp.allclose(out_mb, ref, rtol=1e-4, atol=1e-4), (out_mb, ref)

    # Ragged config: N = 2*11 = 22 rows with tm = 8 -> 3 blocks, the last block
    # has 2 out-of-bounds rows (exercises the in-kernel row-validity masking
    # that replaced the wrapper-side jnp.pad).
    logits_r = jax.random.normal(k_logits2, (B, 11, V), dtype=jnp.float32)
    target_r = jax.random.randint(k_tgt2, (B, 11), 0, V, dtype=jnp.int32)
    target_r = target_r.at[0, 3].set(ignore_index)
    ref_r = unlikelihood_loss_ref(logits_r, target_r, alpha=alpha,
                                  ignore_index=ignore_index)
    out_r = jax.block_until_ready(
        unlikelihood_loss(logits_r, target_r, alpha=alpha,
                          ignore_index=ignore_index, block_rows=8))
    assert jnp.allclose(out_r, ref_r, rtol=1e-4, atol=1e-4), (out_r, ref_r)

    # bf16 logits (exercises 16-row sublane rounding and in-kernel upcast).
    logits_bf = logits.astype(jnp.bfloat16)
    ref_bf = unlikelihood_loss_ref(logits_bf, target, alpha=alpha,
                                   ignore_index=ignore_index)
    out_bf = jax.block_until_ready(
        unlikelihood_loss(logits_bf, target, alpha=alpha,
                          ignore_index=ignore_index))
    assert jnp.allclose(out_bf, ref_bf, rtol=1e-4, atol=1e-4), (out_bf, ref_bf)

    print("KERNEL_OK")
</pallas_src>

<mosaic_0001>
module attributes {stable_mosaic.version = 11 : i64} {
  func.func @_ul_block_kernel(%arg0: i32, %arg1: memref<16x128xf32, #tpu.memory_space<vmem>>, %arg2: memref<16x1xi32, #tpu.memory_space<vmem>>, %arg3: memref<1x128xf32, #tpu.memory_space<vmem>>, %arg4: memref<1x128xf32, #tpu.memory_space<vmem>>, %arg5: memref<16x16xbf16, #tpu.memory_space<vmem>>) attributes {dimension_semantics = [#tpu.dimension_semantics<arbitrary>], iteration_bounds = array<i64: 1>, scalar_prefetch = 0 : i64, scratch_operands = 2 : i64, tpu.core_type = #tpu.core_type<tc>, window_params = [{transform_indices = @transform_0, window_bounds = array<i64: 16, 128>}, {transform_indices = @transform_1, window_bounds = array<i64: 16, 1>}, {pipeline_mode = #tpu.pipeline_mode<synchronous>, transform_indices = @transform_2, window_bounds = array<i64: 1, 128>}]} {
    %c0_i32 = arith.constant 0 : i32
    %0 = arith.cmpi eq, %arg0, %c0_i32 : i32
    %1 = arith.extui %0 : i1 to i32
    %c0_i32_0 = arith.constant 0 : i32
    %2 = arith.cmpi ne, %1, %c0_i32_0 : i32
    scf.if %2 {
      %cst_30 = arith.constant 0.000000e+00 : f32
      %96 = vector.broadcast %cst_30 : f32 to vector<1x128xf32>
      %c0_31 = arith.constant 0 : index
      %c0_32 = arith.constant 0 : index
      %97 = vector.load %arg4[%c0_31, %c0_32] : memref<1x128xf32, #tpu.memory_space<vmem>>, vector<1x128xf32>
      tpu.vector_store %arg4[%c0_31, %c0_32], %96 {strides = array<i32>} : memref<1x128xf32, #tpu.memory_space<vmem>>, vector<1x128xf32>,
      %cst_33 = arith.constant 0.000000e+00 : f32
      %98 = vector.broadcast %cst_33 : f32 to vector<1x128xf32>
      %c0_34 = arith.constant 0 : index
      %c0_35 = arith.constant 0 : index
      %99 = vector.load %arg3[%c0_34, %c0_35] : memref<1x128xf32, #tpu.memory_space<vmem>>, vector<1x128xf32>
      tpu.vector_store %arg3[%c0_34, %c0_35], %98 {strides = array<i32>} : memref<1x128xf32, #tpu.memory_space<vmem>>, vector<1x128xf32>,
      %100 = tpu.iota {dimensions = array<i32: 0>} : vector<16x16xi32>
      %101 = tpu.iota {dimensions = array<i32: 1>} : vector<16x16xi32>
      %102 = arith.cmpi slt, %101, %100 : vector<16x16xi32>
      %103 = arith.extui %102 : vector<16x16xi1> to vector<16x16xi32>
      %104 = arith.sitofp %103 : vector<16x16xi32> to vector<16x16xf32>
      %105 = arith.truncf %104 : vector<16x16xf32> to vector<16x16xbf16>
      %c0_36 = arith.constant 0 : index
      %c0_37 = arith.constant 0 : index
      %106 = vector.load %arg5[%c0_36, %c0_37] : memref<16x16xbf16, #tpu.memory_space<vmem>>, vector<16x16xbf16>
      tpu.vector_store %arg5[%c0_36, %c0_37], %105 {strides = array<i32>} : memref<16x16xbf16, #tpu.memory_space<vmem>>, vector<16x16xbf16>,
    } else {
    }
    %c0 = arith.constant 0 : index
    %c0_1 = arith.constant 0 : index
    %3 = vector.load %arg1[%c0, %c0_1] : memref<16x128xf32, #tpu.memory_space<vmem>>, vector<16x128xf32>
    %c0_2 = arith.constant 0 : index
    %c0_3 = arith.constant 0 : index
    %4 = vector.load %arg2[%c0_2, %c0_3] : memref<16x1xi32, #tpu.memory_space<vmem>>, vector<16x1xi32>
    %c16_i32 = arith.constant 16 : i32
    %5 = arith.muli %arg0, %c16_i32 : i32
    %6 = tpu.iota {dimensions = array<i32: 0>} : vector<16x1xi32>
    %7 = vector.broadcast %5 : i32 to vector<16x1xi32>
    %8 = arith.addi %7, %6 : vector<16x1xi32>
    %c0_i32_4 = arith.constant 0 : i32
    %9 = vector.broadcast %c0_i32_4 : i32 to vector<16x1xi32>
    %10 = arith.cmpi ne, %4, %9 : vector<16x1xi32>
    %c16_i32_5 = arith.constant 16 : i32
    %11 = vector.broadcast %c16_i32_5 : i32 to vector<16x1xi32>
    %12 = arith.cmpi slt, %8, %11 : vector<16x1xi32>
    %13 = arith.andi %10, %12 : vector<16x1xi1>
    %14 = tpu.iota {dimensions = array<i32: 1>} : vector<16x128xi32>
    %15 = vector.broadcast %4 : vector<16x1xi32> to vector<16x128xi32>
    %16 = arith.cmpi eq, %14, %15 : vector<16x128xi32>
    %17 = vector.broadcast %13 : vector<16x1xi1> to vector<16x128xi1>
    %18 = arith.andi %16, %17 : vector<16x128xi1>
    %19 = arith.extui %18 : vector<16x128xi1> to vector<16x128xi32>
    %20 = arith.sitofp %19 : vector<16x128xi32> to vector<16x128xf32>
    %21 = arith.truncf %20 : vector<16x128xf32> to vector<16x128xbf16>
    %c0_6 = arith.constant 0 : index
    %c0_7 = arith.constant 0 : index
    %22 = vector.load %arg5[%c0_6, %c0_7] : memref<16x16xbf16, #tpu.memory_space<vmem>>, vector<16x16xbf16>
    %cst = arith.constant dense<0.000000e+00> : vector<16x128xf32>
    %23 = tpu.matmul %22, %21, %cst {dimension_numbers = #tpu.dot_dimension_numbers<[1], [0], [0], [1], [0, 0, 1, 1], [], []>} : vector<16x16xbf16>, vector<16x128xbf16>, vector<16x128xf32> -> vector<16x128xf32>
    %c0_8 = arith.constant 0 : index
    %c0_9 = arith.constant 0 : index
    %24 = vector.load %arg4[%c0_8, %c0_9] : memref<1x128xf32, #tpu.memory_space<vmem>>, vector<1x128xf32>
    %25 = vector.broadcast %24 : vector<1x128xf32> to vector<16x128xf32>
    %26 = arith.addf %25, %23 : vector<16x128xf32>
    %cst_10 = arith.constant 0.000000e+00 : f32
    %27 = vector.broadcast %cst_10 : f32 to vector<16x128xf32>
    %28 = arith.cmpf ogt, %26, %27 : vector<16x128xf32>
    %29 = vector.broadcast %13 : vector<16x1xi1> to vector<16x128xi1>
    %30 = arith.andi %28, %29 : vector<16x128xi1>
    %cst_11 = arith.constant dense<true> : vector<16x128xi1>
    %31 = arith.xori %18, %cst_11 : vector<16x128xi1>
    %32 = arith.andi %30, %31 : vector<16x128xi1>
    %cst_12 = arith.constant dense<0xFF800000> : vector<16xf32>
    %33 = vector.multi_reduction <maximumf>, %3, %cst_12 [1] : vector<16x128xf32> to vector<16xf32>
    %34 = vector.shape_cast %33 : vector<16xf32> to vector<16x1xf32>
    %35 = vector.broadcast %34 : vector<16x1xf32> to vector<16x128xf32>
    %36 = arith.subf %3, %35 : vector<16x128xf32>
    %37 = math.exp %36 : vector<16x128xf32>
    %cst_13 = arith.constant dense<0.000000e+00> : vector<16xf32>
    %38 = vector.multi_reduction <add>, %37, %cst_13 [1] : vector<16x128xf32> to vector<16xf32>
    %39 = vector.shape_cast %38 : vector<16xf32> to vector<16x1xf32>
    %40 = math.log %39 : vector<16x1xf32>
    %41 = vector.broadcast %39 : vector<16x1xf32> to vector<16x128xf32>
    %42 = arith.subf %41, %37 : vector<16x128xf32>
    %cst_14 = arith.constant 9.99999974E-6 : f32
    %43 = vector.broadcast %cst_14 : f32 to vector<16x1xf32>
    %44 = arith.mulf %43, %39 : vector<16x1xf32>
    %45 = vector.broadcast %44 : vector<16x1xf32> to vector<16x128xf32>
    %46 = arith.maximumf %42, %45 : vector<16x128xf32>
    %47 = math.log %46 : vector<16x128xf32>
    %48 = vector.broadcast %40 : vector<16x1xf32> to vector<16x128xf32>
    %49 = arith.subf %48, %47 : vector<16x128xf32>
    %cst_15 = arith.constant 0.000000e+00 : f32
    %50 = vector.broadcast %cst_15 : f32 to vector<16x128xf32>
    %51 = arith.select %32, %49, %50 : vector<16x128xi1>, vector<16x128xf32>
    %52 = vector.shape_cast %51 : vector<16x128xf32> to vector<1x16x128xf32>
    %cst_16 = arith.constant dense<0.000000e+00> : vector<1xf32>
    %53 = vector.multi_reduction <add>, %52, %cst_16 [1, 2] : vector<1x16x128xf32> to vector<1xf32>
    %54 = vector.shape_cast %53 : vector<1xf32> to vector<1x1x1xf32>
    %55 = vector.extract %54[0, 0, 0] : f32 from vector<1x1x1xf32>
    %cst_17 = arith.constant 0.000000e+00 : f32
    %56 = vector.broadcast %cst_17 : f32 to vector<16x128xf32>
    %57 = arith.select %18, %3, %56 : vector<16x128xi1>, vector<16x128xf32>
    %cst_18 = arith.constant dense<0.000000e+00> : vector<16xf32>
    %58 = vector.multi_reduction <add>, %57, %cst_18 [1] : vector<16x128xf32> to vector<16xf32>
    %59 = vector.shape_cast %58 : vector<16xf32> to vector<16x1xf32>
    %60 = arith.addf %34, %40 : vector<16x1xf32>
    %61 = arith.subf %60, %59 : vector<16x1xf32>
    %cst_19 = arith.constant 0.000000e+00 : f32
    %62 = vector.broadcast %cst_19 : f32 to vector<16x1xf32>
    %63 = arith.select %13, %61, %62 : vector<16x1xi1>, vector<16x1xf32>
    %64 = vector.shape_cast %63 : vector<16x1xf32> to vector<1x16x1xf32>
    %cst_20 = arith.constant dense<0.000000e+00> : vector<1xf32>
    %65 = vector.multi_reduction <add>, %64, %cst_20 [1, 2] : vector<1x16x1xf32> to vector<1xf32>
    %66 = vector.shape_cast %65 : vector<1xf32> to vector<1x1x1xf32>
    %67 = vector.extract %66[0, 0, 0] : f32 from vector<1x1x1xf32>
    %68 = arith.extui %13 : vector<16x1xi1> to vector<16x1xi32>
    %69 = arith.sitofp %68 : vector<16x1xi32> to vector<16x1xf32>
    %70 = vector.shape_cast %69 : vector<16x1xf32> to vector<1x16x1xf32>
    %cst_21 = arith.constant dense<0.000000e+00> : vector<1xf32>
    %71 = vector.multi_reduction <add>, %70, %cst_21 [1, 2] : vector<1x16x1xf32> to vector<1xf32>
    %72 = vector.shape_cast %71 : vector<1xf32> to vector<1x1x1xf32>
    %73 = vector.extract %72[0, 0, 0] : f32 from vector<1x1x1xf32>
    %74 = vector.extract_strided_slice %26 {offsets = [15, 0], sizes = [1, 128], strides = [1, 1]} : vector<16x128xf32> to vector<1x128xf32>
    %75 = vector.extract_strided_slice %21 {offsets = [15, 0], sizes = [1, 128], strides = [1, 1]} : vector<16x128xbf16> to vector<1x128xbf16>
    %76 = arith.extf %75 : vector<1x128xbf16> to vector<1x128xf32>
    %77 = arith.addf %74, %76 : vector<1x128xf32>
    %c0_22 = arith.constant 0 : index
    %c0_23 = arith.constant 0 : index
    %78 = vector.load %arg4[%c0_22, %c0_23] : memref<1x128xf32, #tpu.memory_space<vmem>>, vector<1x128xf32>
    tpu.vector_store %arg4[%c0_22, %c0_23], %77 {strides = array<i32>} : memref<1x128xf32, #tpu.memory_space<vmem>>, vector<1x128xf32>,
    %79 = tpu.iota {dimensions = array<i32: 1>} : vector<1x128xi32>
    %c0_i32_24 = arith.constant 0 : i32
    %80 = vector.broadcast %c0_i32_24 : i32 to vector<1x128xi32>
    %81 = arith.cmpi eq, %79, %80 : vector<1x128xi32>
    %c1_i32 = arith.constant 1 : i32
    %82 = vector.broadcast %c1_i32 : i32 to vector<1x128xi32>
    %83 = arith.cmpi eq, %79, %82 : vector<1x128xi32>
    %c2_i32 = arith.constant 2 : i32
    %84 = vector.broadcast %c2_i32 : i32 to vector<1x128xi32>
    %85 = arith.cmpi eq, %79, %84 : vector<1x128xi32>
    %cst_25 = arith.constant 0.000000e+00 : f32
    %86 = vector.broadcast %73 : f32 to vector<1x128xf32>
    %87 = vector.broadcast %cst_25 : f32 to vector<1x128xf32>
    %88 = arith.select %85, %86, %87 : vector<1x128xi1>, vector<1x128xf32>
    %89 = vector.broadcast %67 : f32 to vector<1x128xf32>
    %90 = arith.select %83, %89, %88 : vector<1x128xi1>, vector<1x128xf32>
    %91 = vector.broadcast %55 : f32 to vector<1x128xf32>
    %92 = arith.select %81, %91, %90 : vector<1x128xi1>, vector<1x128xf32>
    %c0_26 = arith.constant 0 : index
    %c0_27 = arith.constant 0 : index
    %93 = vector.load %arg3[%c0_26, %c0_27] : memref<1x128xf32, #tpu.memory_space<vmem>>, vector<1x128xf32>
    %94 = arith.addf %93, %92 : vector<1x128xf32>
    %c0_28 = arith.constant 0 : index
    %c0_29 = arith.constant 0 : index
    %95 = vector.load %arg3[%c0_28, %c0_29] : memref<1x128xf32, #tpu.memory_space<vmem>>, vector<1x128xf32>
    tpu.vector_store %arg3[%c0_28, %c0_29], %94 {strides = array<i32>} : memref<1x128xf32, #tpu.memory_space<vmem>>, vector<1x128xf32>,
    return
  }
  func.func @transform_0(%arg0: i32) -> (i32, i32) {
    %c0_i32 = arith.constant 0 : i32
    %c0_i32_0 = arith.constant 0 : i32
    return %arg0, %c0_i32 : i32, i32
  }
  func.func @transform_1(%arg0: i32) -> (i32, i32) {
    %c0_i32 = arith.constant 0 : i32
    %c0_i32_0 = arith.constant 0 : i32
    return %arg0, %c0_i32 : i32, i32
  }
  func.func @transform_2(%arg0: i32) -> (i32, i32) {
    %c0_i32 = arith.constant 0 : i32
    %c0_i32_0 = arith.constant 0 : i32
    %c0_i32_1 = arith.constant 0 : i32
    return %c0_i32, %c0_i32_0 : i32, i32
  }
}

</mosaic_0001>

<bundles_post_ra>
// kernel: tpu_custom_call.1
= control target key start
LH: loop header
LB: loop body
LE: loop exit
PB: predicated region body
PF: predicated region fallthrough
CT: control target
= control target key end

     0   :  { %v300_v2 = vmov 0   ;;  %s409_s0 = inlined_call_operand.vmem [shape: f32[16,128], index: 0, kind: input, shape index: {}]   ;;  %s410_s1 = inlined_call_operand.vmem [shape: s32[16,1], index: 1, kind: input, shape index: {}]   ;;  %s411_s2 = inlined_call_operand.hbm [shape: f32[1,128], index: 2, kind: output, shape index: {}]  }
   0x1   :  { %v35_v0 = vld [vmem:[%s409_s0] sm:$0xff]  ;;  %259 = vset.pattern.permute.xlu0 %v300_v2 }
   0x2   :  { %v325_v1 = vld [vmem:[%s410_s1] sm:$0xff]  ;;  %125 = vmax.xlane.f32.xlu2 %v35_v0 }
   0x3   :  { %vm46_vm0 = vcmp.ne.s32.totalorder %v325_v1, 0 }
   0x4   :  { %7 = vsyncpa [#allocation5], 0  ;;  %260 = vset.pattern.permute.xlu1 %v300_v2  ;;  %55 = vperm.xlu0 %259, %v325_v1   ;;  %v62_v3 = vsel %vm46_vm0, 1, %v300_v2  ;;  %v334_v4 = vld [vmem:[%s410_s1 + $0x8] sm:$0xff]  ;;  %v19_v7 = vlaneseq  ;;  %v301_v10 = vmov 0.0   ;;  %vm32_vm4 = vcmask 125952  }
   0x5   :  { %65 = vperm.xlu1 %260, %v62_v3   ;;  %vm47_vm1 = vcmp.ne.s32.totalorder %v334_v4, 0  ;;  %v36_v5 = vld [vmem:[%s409_s0 + $0x8] sm:$0xff]  ;;  %17 = vst [vmem:[#allocation2] sm:$0x1] %v301_v10  ;;  %vm93_vm11 = vcmask 130048   ;;  %vm179_vm12 = vcmask 7168  }
   0x6   :  { %v63_v6 = vsel %vm47_vm1, 1, %v300_v2  ;;  %v20_v8 = vshrl.u32 %v19_v7, 7  ;;  %v344_v11 = vand.u32 127, %v19_v7  ;;  %18 = vst [vmem:[#allocation4] sm:$0x1] %v301_v10  ;;  %vm302_vm15 = vmmov 1  }
   0x7   :  { %s303_s18 = smov [#allocation4]   ;;  %s228_s22 = sshll.u32 %s411_s2, 4  ;;  %s229_s22 = int_to_ptr.hbm [resolvable:$true] %s228_s22 }
   0x8   :  { %v21_v9 = vadd.s32 8, %v20_v8  ;;  %vm24_vm2 = vcmp.lt.s32.totalorder %v344_v11, %v20_v8  ;;  %s226_s19 = sshll.u32 %s303_s18, 4  ;;  %s227_s19 = int_to_ptr.vmem [resolvable:$true] %s226_s19 }
   0x9   :  { %v237_v12 = vsel %vm24_vm2, 1.0, %v301_v10 }
   0xa   :  { %127 = vmax.xlane.f32.xlu2 %v36_v5  ;;  %vm25_vm3 = vcmp.lt.s32.totalorder %v344_v11, %v21_v9  ;;  %v30_v14 = vpack.c.bf16 %v237_v12, %v237_v12 }
   0xb   :  { %v238_v13 = vsel %vm25_vm3, 1.0, %v301_v10 }
   0xc   :  { %58 = vperm.xlu0 %259, %v334_v4   ;;  %v31_v15 = vpack.c.bf16 %v238_v13, %v238_v13  ;;  %33 = vst.msk [vmem:[#allocation3] sm:$0xf] %vm32_vm4, %v30_v14  ;;  %v261_v55 = vld [vmem:[#allocation2] ss:$0 sm:$0xff] }
   0xd   :  { %68 = vperm.xlu1 %260, %v63_v6  }
   0xe   :  { %34 = vst.msk [vmem:[#allocation3 + $0x4] sm:$0xf] %vm32_vm4, %v31_v15 }
  0x15   :  { %v248_v38 = vld [vmem:[#allocation3] sm:$0xff] }
  0x75   :  { %v126_v17 = vpop.xlane.xlu2 %125 }
  0x76   :  { %v56_v16 = vpop.permute.xlu0 %55  ;;  %v129_v18 = vsub.f32 %v35_v0, %v126_v17 }
  0x77   :  { %vm60_vm5 = vcmp.eq.s32.totalorder %v344_v11, %v56_v16  ;;  %v352_v19 = vpop.permute.xlu1 %65 }
  0x78   :  { %vm70_vm6 = vcmp.eq.s32.totalorder %v352_v19, 1  ;;  %v131_v20 = vmul.f32 1.442695, %v129_v18  ;;  %v246_v18 = vsel %vm46_vm0, 1.0, %v301_v10  ;;  %v247_v19 = vsel %vm47_vm1, 1.0, %v301_v10 }
  0x79   :  { %vm357_vm7 = vmand %vm60_vm5, %vm70_vm6  ;;  %v195_v21 = vsel %vm179_vm12, %v247_v19, 0.0 }
  0x7a   :  { %v167_v22 = vsel %vm357_vm7, %v35_v0, 0.0  ;;  %262 = vpow2.f32 %v131_v20  ;;  %v239_v25 = vsel %vm357_vm7, 1.0, %v301_v10  ;;  %vm121_vm2 = vmxor %vm357_vm7, %vm302_vm15  ;;  %v194_v20 = vsel %vm179_vm12, %v246_v18, 0.0 }
  0x7b   :  { %169 = vadd.xlane.f32.xlu2 %v167_v22  ;;  %v78_v31 = vpack.c.bf16 %v239_v25, %v239_v25  ;;  %v196_v22 = vadd.f32 %v195_v21, %v194_v20 }
  0x7d   :  { %v128_v24 = vpop.xlane.xlu2 %127  ;;  %v89_v35 = vunpack.c.l.b16 %v78_v31 }
  0x7e   :  { %v59_v23 = vpop.permute.xlu0 %58  ;;  %v130_v26 = vsub.f32 %v36_v5, %v128_v24 }
  0x7f   :  { %vm61_vm8 = vcmp.eq.s32.totalorder %v344_v11, %v59_v23  ;;  %v367_v27 = vpop.permute.xlu1 %68 }
  0x80   :  { %vm71_vm9 = vcmp.eq.s32.totalorder %v367_v27, 1  ;;  %v263_v28 = vpop.eup %262  ;;  %v133_v29 = vmul.f32 1.442695, %v130_v26 }
  0x81   :  { %vm372_vm10 = vmand %vm61_vm8, %vm71_vm9  ;;  %135 = vadd.xlane.f32.xlu0 %v263_v28 }
  0x82   :  { %v168_v32 = vsel %vm372_vm10, %v36_v5, 0.0  ;;  %v240_v33 = vsel %vm372_vm10, 1.0, %v301_v10  ;;  %264 = vpow2.f32 %v133_v29  ;;  %vm122_vm3 = vmxor %vm372_vm10, %vm302_vm15 }
  0x83   :  { %171 = vadd.xlane.f32.xlu2 %v168_v32  ;;  %v79_v34 = vpack.c.bf16 %v240_v33, %v240_v33 }
  0x85   :  { %v90_v36 = vunpack.c.l.b16 %v79_v34 }
  0x87   :  { %v91_v37 = vpack.c.b16 %v90_v36, %v89_v35 }
  0x88   :  { %v265_v39 = vpop.eup %264 }
  0x89   :  { %104 = vmatpush.bf16.msra.mxu0 %v91_v37  ;;  %137 = vadd.xlane.f32.xlu1 %v265_v39 }
  0x8c   :  { %245 = vmatmul.msk.bf16.vlgmr.msra.gmra.mxu0 %vm93_vm11, %v248_v38 }
  0xee   :  { %v170_v44 = vpop.xlane.xlu2 %169 }
  0xf4   :  { %v136_v40 = vpop.xlane.xlu0 %135 }
  0xf5   :  { %266 = vlog2.f32 %v136_v40  ;;  %v143_v45 = vsub.f32 %v136_v40, %v263_v28  ;;  %v145_v46 = vmul.f32 1e-05, %v136_v40 }
  0xf6   :  { %v172_v57 = vpop.xlane.xlu2 %171 }
  0xf7   :  { %v147_v50 = vmax.f32 %v143_v45, %v145_v46 }
  0xfb   :  { %v267_v41 = vpop.eup %266 }
  0xfc   :  { %v140_v42 = vmul.f32 0.6931472, %v267_v41  ;;  %v138_v43 = vpop.xlane.xlu1 %137 }
  0xfd   :  { %268 = vlog2.f32 %v138_v43  ;;  %v144_v47 = vsub.f32 %v138_v43, %v265_v39  ;;  %v146_v48 = vmul.f32 1e-05, %v138_v43 }
  0xfe   :  { %v173_v49 = vadd.f32 %v140_v42, %v126_v17  ;;  %270 = vlog2.f32 %v147_v50 }
  0xff   :  { %v148_v52 = vmax.f32 %v144_v47, %v146_v48 }
 0x100   :  { %v175_v54 = vsub.f32 %v173_v49, %v170_v44  ;;  %v218_v44 = vld [vmem:[#allocation4] sm:$0x1] }
 0x101   :  { %272 = vlog2.f32 %v148_v52 }
 0x102   :  { %v177_v60 = vsel %vm46_vm0, %v175_v54, 0.0  ;;  %vm211_vm0 = vcmp.eq.s32.totalorder %v344_v11, 2 }
 0x103   :  { %v269_v51 = vpop.eup %268  ;;  %v180_v63 = vsel %vm179_vm12, %v177_v60, 0.0 }
 0x104   :  { %v142_v53 = vmul.f32 0.6931472, %v269_v51  ;;  %v271_v2 = vpop.eup %270 }
 0x105   :  { %v150_v6 = vmul.f32 0.6931472, %v271_v2 }
 0x106   :  { %v174_v56 = vadd.f32 %v142_v53, %v128_v24 }
 0x107   :  { %v273_v5 = vpop.eup %272  ;;  %v153_v13 = vsub.f32 %v140_v42, %v150_v6 }
 0x108   :  { %v176_v59 = vsub.f32 %v174_v56, %v172_v57  ;;  %v152_v7 = vmul.f32 0.6931472, %v273_v5 }
 0x109   :  { %v106_v58 = vpop.f32.mrf.mxu0 }
 0x10a   :  { %v115_v61 = vadd.f32 %v261_v55, %v106_v58  ;;  %v178_v62 = vsel %vm47_vm1, %v176_v59, 0.0  ;;  %v154_v14 = vsub.f32 %v142_v53, %v152_v7  ;;  %vm210_vm1 = vcmp.eq.s32.totalorder %v344_v11, 1 }
 0x10b   :  { %v181_v0 = vsel %vm179_vm12, %v178_v62, 0.0 }
 0x10c   :  { %v182_v3 = vadd.f32 %v181_v0, %v180_v63  ;;  %vm117_vm13 = vcmp.gt.f32.partialorder %v115_v61, 0.0 }
 0x10d   :  { %vm119_vm14 = vmand %vm117_vm13, %vm70_vm6  ;;  %vm209_vm6 = vcmp.eq.s32.totalorder %v344_v11, 0 }
 0x10e   :  { %183 = vadd.xlane.f32.xlu2 %v182_v3  ;;  %vm123_vm4 = vmand %vm119_vm14, %vm121_vm2 }
 0x10f   :  { %v155_v15 = vsel %vm123_vm4, %v153_v13, 0.0 }
 0x111   :  { %v108_v8 = vpop.f32.mrf.mxu0 }
 0x112   :  { %v116_v9 = vadd.f32 %v261_v55, %v108_v8 }
 0x114   :  { %vm118_vm5 = vcmp.gt.f32.partialorder %v116_v9, 0.0  ;;  %v207_v12 = vadd.f32 %v240_v33, %v116_v9 }
 0x115   :  { %vm120_vm8 = vmand %vm118_vm5, %vm71_vm9 }
 0x116   :  { %208 = vst [vmem:[#allocation2 - $0x7] sm:$0x80] %v207_v12  ;;  %vm124_vm11 = vmand %vm120_vm8, %vm122_vm3 }
 0x117   :  { %v156_v16 = vsel %vm124_vm11, %v154_v14, 0.0 }
 0x118   :  { %v157_v17 = vadd.f32 %v156_v16, %v155_v15 }
 0x11a   :  { %158 = vadd.xlane.f32.xlu2 %v157_v17 }
 0x122   :  { %197 = vadd.xlane.f32.xlu2 %v196_v22 }
 0x181   :  { %v184_v23 = vpop.xlane.xlu2 %183 }
 0x182   :  { %v185_v24 = vrot.slane %v184_v23, 4 }
 0x184   :  { %v186_v25 = vadd.f32 %v185_v24, %v184_v23 }
 0x186   :  { %v187_v26 = vrot.slane %v186_v25, 2 }
 0x188   :  { %v188_v1 = vadd.f32 %v187_v26, %v186_v25 }
 0x18a   :  { %v189_v4 = vrot.slane %v188_v1, 1 }
 0x18c   :  { %v190_v36 = vadd.f32 %v189_v4, %v188_v1 }
 0x18d   :  { %v159_v27 = vpop.xlane.xlu2 %158 }
 0x18e   :  { %v160_v28 = vrot.slane %v159_v27, 4 }
 0x190   :  { %v161_v29 = vadd.f32 %v160_v28, %v159_v27 }
 0x192   :  { %v162_v30 = vrot.slane %v161_v29, 2 }
 0x194   :  { %v163_v31 = vadd.f32 %v162_v30, %v161_v29 }
 0x195   :  { %v198_v32 = vpop.xlane.xlu2 %197 }
 0x196   :  { %v199_v10 = vrot.slane %v198_v32, 4  ;;  %v164_v33 = vrot.slane %v163_v31, 1 }
 0x198   :  { %v200_v34 = vadd.f32 %v199_v10, %v198_v32  ;;  %v165_v35 = vadd.f32 %v164_v33, %v163_v31 }
 0x19a   :  { %v201_v37 = vrot.slane %v200_v34, 2  ;;  %249 = vpush %v165_v35 }
 0x19b   :  { %251 = vpush %v190_v36 }
 0x19c   :  { %v202_v38 = vadd.f32 %v201_v37, %v200_v34 }
 0x19e   :  { %v203_v39 = vrot.slane %v202_v38, 1 }
 0x1a0   :  { %v204_v40 = vadd.f32 %v203_v39, %v202_v38 }
 0x1a2   :  { %253 = vpush %v204_v40 }
 0x1cb   :  { %s250_s0 = spop %249 }
 0x1cc   :  { %s252_s1 = spop %251  ;;  %v216_v45 = vstv %s250_s0 }
 0x1cd   :  { %v214_v42 = vstv %s252_s1 }
 0x1d3   :  { %s254_s17 = spop %253 }
 0x1d4   :  { %v212_v41 = vstv %s254_s17 }
 0x1d5   :  { %v213_v43 = vsel %vm211_vm0, %v212_v41, 0.0 }
 0x1d6   :  { %v215_v46 = vsel %vm210_vm1, %v214_v42, %v213_v43 }
 0x1d7   :  { %v217_v47 = vsel %vm209_vm6, %v216_v45, %v215_v46 }
 0x1d8   :  { %v219_v48 = vadd.f32 %v218_v44, %v217_v47 }
 0x1da   :  { %220 = vst [vmem:[#allocation4] sm:$0x1] %v219_v48 }
 0x1db   :  { %231 = dma.vmem_to_hbm [thread:$0]  %s227_s19, 16, %s229_s22, [#allocation5]  }
 0x1dc   :  { %298 = dma.done.wait [#allocation5], 16  }
 0x1dd   :  { %299 = vsyncadd [#allocation5], 4294967280 }
 0x1de   :  { %236 = vsyncpa [#allocation5], 1 }

</bundles_post_ra>
